<compile_context>
chip_gen: v7x
topology: tpu7x:2x2x1
jax: 0.10.0
libtpu: 0.0.40
codegen_flags: <defaults>
</compile_context>

<pallas_src>
import functools
import math

import jax
import jax.numpy as jnp
from jax import lax
from jax.experimental import pallas as pl
from jax.experimental.pallas import tpu as pltpu


# --------------------------------------------------------------------------- kernel


def _inr_attn_kernel(q_ref, k_ref, v_ref, s_ref, m_ref, o_ref, *, d_model, exp_dtype):
    # q_ref: (G, tq, D)  k_ref/v_ref: (G, L, D)  s_ref/m_ref: (G, tq, L)  o_ref: (G, tq, D)

    # Fold 1/sqrt(D) into the small (G, tq, D) Q block (L/D x cheaper than scaling scores).
    scale = jnp.asarray(1.0 / math.sqrt(d_model), dtype=q_ref.dtype)
    q = q_ref[...] * scale

    # scores = Q K^T : contract last dims, batch over heads (no explicit K.T / relayout).
    scores = lax.dot_general(
        q, k_ref[...],
        dimension_numbers=(((2,), (2,)), ((0,), (0,))),
        preferred_element_type=jnp.float32,
    )                                                          # (G, tq, L) f32

    # Masked structural-bias softmax, fused straight into the score update (VPU select
    # is free; keeps ~3 live f32 row buffers instead of 5-6).
    bias = jnp.where(m_ref[...] == 0, jnp.float32(-1000000000.0),
                     s_ref[...].astype(jnp.float32))           # (G, tq, L)
    bias = bias - jnp.max(bias, axis=-1, keepdims=True)
    if exp_dtype is not None:                                  # bf16 exp on v6e/v7x (opt-in)
        bias = bias.astype(exp_dtype)
    bias = jnp.exp(bias).astype(jnp.float32)
    scores = scores + bias * pl.reciprocal(
        jnp.sum(bias, axis=-1, keepdims=True), approx=True)

    # NOTE: reference's second scores.masked_fill(...) is not in-place -> no-op here too.

    # prob = softmax(scores, axis=-1) -- overwrite scores in place.
    scores = scores - jnp.max(scores, axis=-1, keepdims=True)
    if exp_dtype is not None:
        scores = scores.astype(exp_dtype)
    scores = jnp.exp(scores).astype(jnp.float32)
    prob = scores * pl.reciprocal(
        jnp.sum(scores, axis=-1, keepdims=True), approx=True)

    # dropout (eval / p=0) -> identity
    # TODO(synk): training-mode nn.Dropout (random mask via PRNG) is not implemented.

    out = lax.dot_general(
        prob.astype(v_ref.dtype), v_ref[...],
        dimension_numbers=(((2,), (1,)), ((0,), (0,))),
        preferred_element_type=jnp.float32,
    )                                                          # (G, tq, D) f32
    o_ref[...] = out.astype(o_ref.dtype)


# ------------------------------------------------------------------ tiling / budgets


def _round_up(x, m):
    return (x + m - 1) // m * m


def _padded_block_bytes(shape, dtype):
    """VMEM bytes of one block after physical (sublane, lane) padding."""
    isz = jnp.dtype(dtype).itemsize
    sublane = {4: 8, 2: 16, 1: 32}.get(isz, 8)
    dims = list(shape)
    dims[-1] = _round_up(dims[-1], 128)
    if len(dims) >= 2:
        dims[-2] = _round_up(dims[-2], sublane)
    n = 1
    for d in dims:
        n *= d
    return n * isz


def _physical_vmem_bytes():
    """Per-core physical VMEM; generation-gated with a conservative fallback."""
    try:
        info = pltpu.get_tpu_info()
        cap = getattr(info, "vmem_capacity_bytes", None)
        if cap:
            return int(cap)
    except Exception:
        pass
    try:
        kind = jax.devices()[0].device_kind.lower()
    except Exception:
        kind = ""
    if "v7" in kind:
        return 64 << 20
    if any(t in kind for t in ("v4", "v5", "v6")):
        return 128 << 20
    return 64 << 20


def _footprint_bytes(G, tq, L, D, dtypes, bias_bufs):
    """Padded VMEM footprint of one grid step: double-buffered blocks + f32 temps."""
    q_dt, k_dt, v_dt, s_dt, m_dt, o_dt = dtypes
    per = 0
    per += 2 * _padded_block_bytes((G, tq, D), q_dt)
    per += 2 * _padded_block_bytes((G, L, D), k_dt)       # K resident but double-buffered
    per += 2 * _padded_block_bytes((G, L, D), v_dt)
    per += 2 * _padded_block_bytes((G, tq, D), o_dt)
    per += bias_bufs * _padded_block_bytes((G, tq, L), s_dt)
    per += bias_bufs * _padded_block_bytes((G, tq, L), m_dt)
    per += 4 * _padded_block_bytes((G, tq, L), jnp.float32)   # live f32 temporaries
    per += 8 * _padded_block_bytes((G, tq, 1), jnp.float32)   # row statistics
    per += 1 << 20                                            # internal scratch slack
    return per


def _choose_tiling(BH, L, D, dtypes, budget, tq_cap):
    """Pick (G, tq): minimize grid steps subject to the padded-VMEM budget."""
    tq_hi = min(_round_up(L, 8), _round_up(tq_cap, 8))
    divisors = [g for g in range(1, min(BH, 32) + 1) if BH % g == 0]
    best = None
    for g in divisors:
        tq = None
        t = tq_hi
        while t >= 8:
            if _footprint_bytes(g, t, L, D, dtypes, 2) <= budget:
                tq = t
                break
            t -= 8
        if tq is None:
            continue
        n_q = -(-L // tq)
        steps = (BH // g) * n_q
        key = (steps, -(g * tq))
        if best is None or key < best[0]:
            best = (key, g, tq)
    if best is None:
        # TODO(synk): very long sequences need a K-tiled (flash-style) variant with an
        # online softmax; fall back to minimal blocks (may spill).
        return 1, 8
    return best[1], best[2]


# ------------------------------------------------------------------------- wrapper


def inr_attn(query, key, value, str_mat, attn_mask, dropout=0.0,
             stream_dtype=None, exp_dtype=None):
    """query/key/value: [B, H, L, D]; str_mat/attn_mask: [B, H, L, L].

    stream_dtype: optionally downcast Q/K/V/str_mat for HBM streaming (e.g. bf16 on
                  v5e, halves the dominant bias DMA).  Default None = input precision.
    exp_dtype:    optionally compute the two row-softmax exponentials in bf16
                  (EUP-bound v6e/v7x).  Default None = f32.
    """
    del dropout  # eval-mode identity
    B, H, L, D = query.shape
    BH = B * H

    if stream_dtype is not None:
        query = query.astype(stream_dtype)
        key = key.astype(stream_dtype)
        value = value.astype(stream_dtype)
        str_mat = str_mat.astype(stream_dtype)

    q = query.reshape(BH, L, D)
    k = key.reshape(BH, L, D)
    v = value.reshape(BH, L, D)
    s = str_mat.reshape(BH, L, L)
    m = attn_mask.reshape(BH, L, L)
    if m.dtype == jnp.bool_:
        m = m.astype(jnp.int8)      # bool lowering is fragile; int8 keeps 1-byte stream
    out_dtype = query.dtype

    # Generation-gated VMEM ceiling: ~96 MiB on 128 MiB parts (v5e/v6e), ~56 MiB on v7x.
    phys = _physical_vmem_bytes()
    headroom = (32 << 20) if phys >= (96 << 20) else max(8 << 20, phys // 8)
    cap = max(phys - headroom, int(phys * 0.75))
    budget = cap - (2 << 20)
    tq_cap = 512 if phys >= (96 << 20) else 256   # v7x: smaller q tile (f32 temps)

    dtypes = (q.dtype, k.dtype, v.dtype, s.dtype, m.dtype, out_dtype)
    G, tq = _choose_tiling(BH, L, D, dtypes, budget, tq_cap)

    # Guard awkward L: pad the query axis to a multiple of tq instead of tq=L fallback.
    Lq = _round_up(L, tq)
    if Lq != L:
        pad = Lq - L
        q = jnp.pad(q, ((0, 0), (0, pad), (0, 0)))
        s = jnp.pad(s, ((0, 0), (0, pad), (0, 0)))
        m = jnp.pad(m, ((0, 0), (0, pad), (0, 0)), constant_values=1)
    nq = Lq // tq
    grid = (BH // G, nq)

    # Deeper buffering of the dominant bias/mask DMA stream only when the grid is deep
    # and the padded footprint still closes (mostly v5e/v6e after raising the cap).
    bias_bufs = 2
    if (grid[0] * grid[1] >= 4
            and _padded_block_bytes((G, tq, L), s.dtype) >= (512 << 10)
            and _footprint_bytes(G, tq, L, D, dtypes, 3) <= budget):
        bias_bufs = 3

    def _spec(shape, index_map, bufs=2):
        if bufs > 2:
            try:
                return pl.BlockSpec(shape, index_map, pipeline_mode=pl.Buffered(bufs))
            except TypeError:
                pass
        return pl.BlockSpec(shape, index_map)

    q_spec = pl.BlockSpec((G, tq, D), lambda b, qi: (b, qi, 0))
    kv_spec = pl.BlockSpec((G, L, D), lambda b, qi: (b, 0, 0))       # resident across q tiles
    bias_spec = _spec((G, tq, L), lambda b, qi: (b, qi, 0), bias_bufs)
    mask_spec = _spec((G, tq, L), lambda b, qi: (b, qi, 0), bias_bufs)

    out = pl.pallas_call(
        functools.partial(_inr_attn_kernel, d_model=D, exp_dtype=exp_dtype),
        out_shape=jax.ShapeDtypeStruct((BH, Lq, D), out_dtype),
        grid_spec=pltpu.PrefetchScalarGridSpec(
            num_scalar_prefetch=0,
            grid=grid,
            in_specs=[q_spec, kv_spec, kv_spec, bias_spec, mask_spec],
            out_specs=q_spec,
        ),
        compiler_params=pltpu.CompilerParams(
            # Head-group axis parallel (megacore keeps per-core resident K/V),
            # query-tile axis arbitrary so K/V are not re-fetched per tile.
            dimension_semantics=("parallel", "arbitrary"),
            vmem_limit_bytes=int(cap),
        ),
    )(q, k, v, s, m)

    if Lq != L:
        out = out[:, :L, :]
    return out.reshape(B, H, L, D)


# ------------------------------------------------------------------------ reference


def inr_attn_ref(query, key, value, str_mat, attn_mask):
    """Pure-JAX reference mirroring the PyTorch forward."""
    d = query.shape[-1]
    scores = jnp.einsum("bhqd,bhkd->bhqk", query, key) / math.sqrt(d)
    sm = jnp.where(attn_mask == 0.0, -1000000000.0, str_mat)
    sm = jax.nn.softmax(sm, axis=-1)
    scores = scores + sm
    # reference's second masked_fill is not in-place -> no-op
    prob = jax.nn.softmax(scores, axis=-1)
    return jnp.einsum("bhqk,bhkd->bhqd", prob, value)


if __name__ == "__main__":
    B, H, L, D = 2, 4, 8, 32

    key0 = jax.random.PRNGKey(0)
    kq, kk, kv, ks, km = jax.random.split(key0, 5)

    query = jax.random.normal(kq, (B, H, L, D), dtype=jnp.float32)
    key_t = jax.random.normal(kk, (B, H, L, D), dtype=jnp.float32)
    value = jax.random.normal(kv, (B, H, L, D), dtype=jnp.float32)
    str_mat = jax.random.normal(ks, (B, H, L, L), dtype=jnp.float32)
    # binary mask (0./1.) with some zeros; keep at least one live key per row
    attn_mask = (jax.random.uniform(km, (B, H, L, L)) > 0.3).astype(jnp.float32)
    attn_mask = attn_mask.at[..., 0].set(1.0)

    out = inr_attn(query, key_t, value, str_mat, attn_mask, dropout=0.0)
    out = jax.block_until_ready(out)

    ref = inr_attn_ref(query, key_t, value, str_mat, attn_mask)
    assert out.shape == (B, H, L, D)
    # approx=True EUP reciprocals trade ~1e-4..1e-3 relative error for a free slot.
    err = float(jnp.max(jnp.abs(out - ref)))
    assert jnp.allclose(out, ref, atol=2e-3, rtol=2e-3), err

    print("KERNEL_OK")
</pallas_src>

<mosaic_0001>
module attributes {stable_mosaic.version = 11 : i64} {
  func.func @_inr_attn_kernel(%arg0: i32, %arg1: i32, %arg2: memref<8x8x32xf32, #tpu.memory_space<vmem>>, %arg3: memref<8x8x32xf32, #tpu.memory_space<vmem>>, %arg4: memref<8x8x32xf32, #tpu.memory_space<vmem>>, %arg5: memref<8x8x8xf32, #tpu.memory_space<vmem>>, %arg6: memref<8x8x8xf32, #tpu.memory_space<vmem>>, %arg7: memref<8x8x32xf32, #tpu.memory_space<vmem>>) attributes {dimension_semantics = [#tpu.dimension_semantics<parallel>, #tpu.dimension_semantics<arbitrary>], iteration_bounds = array<i64: 1, 1>, scalar_prefetch = 0 : i64, scratch_operands = 0 : i64, tpu.core_type = #tpu.core_type<tc>, window_params = [{transform_indices = @transform_0, window_bounds = array<i64: 8, 8, 32>}, {transform_indices = @transform_1, window_bounds = array<i64: 8, 8, 32>}, {transform_indices = @transform_2, window_bounds = array<i64: 8, 8, 32>}, {transform_indices = @transform_3, window_bounds = array<i64: 8, 8, 8>}, {transform_indices = @transform_4, window_bounds = array<i64: 8, 8, 8>}, {transform_indices = @transform_5, window_bounds = array<i64: 8, 8, 32>}]} {
    %c0 = arith.constant 0 : index
    %c0_0 = arith.constant 0 : index
    %c0_1 = arith.constant 0 : index
    %0 = vector.load %arg2[%c0, %c0_0, %c0_1] : memref<8x8x32xf32, #tpu.memory_space<vmem>>, vector<8x8x32xf32>
    %cst = arith.constant 0.176776692 : f32
    %1 = vector.broadcast %cst : f32 to vector<8x8x32xf32>
    %2 = arith.mulf %0, %1 : vector<8x8x32xf32>
    %c0_2 = arith.constant 0 : index
    %c0_3 = arith.constant 0 : index
    %c0_4 = arith.constant 0 : index
    %3 = vector.load %arg3[%c0_2, %c0_3, %c0_4] : memref<8x8x32xf32, #tpu.memory_space<vmem>>, vector<8x8x32xf32>
    %cst_5 = arith.constant dense<0.000000e+00> : vector<8x8x8xf32>
    %4 = tpu.matmul %2, %3, %cst_5 {dimension_numbers = #tpu.dot_dimension_numbers<[2], [2], [1], [1], [0, 0, 0, 1, 1, 1], [0], [0]>} : vector<8x8x32xf32>, vector<8x8x32xf32>, vector<8x8x8xf32> -> vector<8x8x8xf32>
    %c0_6 = arith.constant 0 : index
    %c0_7 = arith.constant 0 : index
    %c0_8 = arith.constant 0 : index
    %5 = vector.load %arg6[%c0_6, %c0_7, %c0_8] : memref<8x8x8xf32, #tpu.memory_space<vmem>>, vector<8x8x8xf32>
    %cst_9 = arith.constant 0.000000e+00 : f32
    %6 = vector.broadcast %cst_9 : f32 to vector<8x8x8xf32>
    %7 = arith.cmpf oeq, %5, %6 : vector<8x8x8xf32>
    %c0_10 = arith.constant 0 : index
    %c0_11 = arith.constant 0 : index
    %c0_12 = arith.constant 0 : index
    %8 = vector.load %arg5[%c0_10, %c0_11, %c0_12] : memref<8x8x8xf32, #tpu.memory_space<vmem>>, vector<8x8x8xf32>
    %cst_13 = arith.constant -1.000000e+09 : f32
    %9 = vector.broadcast %cst_13 : f32 to vector<8x8x8xf32>
    %10 = arith.select %7, %9, %8 : vector<8x8x8xi1>, vector<8x8x8xf32>
    %cst_14 = arith.constant dense<0xFF800000> : vector<8x8xf32>
    %11 = vector.multi_reduction <maximumf>, %10, %cst_14 [2] : vector<8x8x8xf32> to vector<8x8xf32>
    %12 = vector.shape_cast %11 : vector<8x8xf32> to vector<8x8x1xf32>
    %13 = vector.broadcast %12 : vector<8x8x1xf32> to vector<8x8x8xf32>
    %14 = arith.subf %10, %13 : vector<8x8x8xf32>
    %15 = math.exp %14 : vector<8x8x8xf32>
    %cst_15 = arith.constant dense<0.000000e+00> : vector<8x8xf32>
    %16 = vector.multi_reduction <add>, %15, %cst_15 [2] : vector<8x8x8xf32> to vector<8x8xf32>
    %17 = vector.shape_cast %16 : vector<8x8xf32> to vector<8x8x1xf32>
    %18 = tpu.reciprocal %17 {approx = true} : vector<8x8x1xf32> -> vector<8x8x1xf32>
    %19 = vector.broadcast %18 : vector<8x8x1xf32> to vector<8x8x8xf32>
    %20 = arith.mulf %15, %19 : vector<8x8x8xf32>
    %21 = arith.addf %4, %20 : vector<8x8x8xf32>
    %cst_16 = arith.constant dense<0xFF800000> : vector<8x8xf32>
    %22 = vector.multi_reduction <maximumf>, %21, %cst_16 [2] : vector<8x8x8xf32> to vector<8x8xf32>
    %23 = vector.shape_cast %22 : vector<8x8xf32> to vector<8x8x1xf32>
    %24 = vector.broadcast %23 : vector<8x8x1xf32> to vector<8x8x8xf32>
    %25 = arith.subf %21, %24 : vector<8x8x8xf32>
    %26 = math.exp %25 : vector<8x8x8xf32>
    %cst_17 = arith.constant dense<0.000000e+00> : vector<8x8xf32>
    %27 = vector.multi_reduction <add>, %26, %cst_17 [2] : vector<8x8x8xf32> to vector<8x8xf32>
    %28 = vector.shape_cast %27 : vector<8x8xf32> to vector<8x8x1xf32>
    %29 = tpu.reciprocal %28 {approx = true} : vector<8x8x1xf32> -> vector<8x8x1xf32>
    %30 = vector.broadcast %29 : vector<8x8x1xf32> to vector<8x8x8xf32>
    %31 = arith.mulf %26, %30 : vector<8x8x8xf32>
    %c0_18 = arith.constant 0 : index
    %c0_19 = arith.constant 0 : index
    %c0_20 = arith.constant 0 : index
    %32 = vector.load %arg4[%c0_18, %c0_19, %c0_20] : memref<8x8x32xf32, #tpu.memory_space<vmem>>, vector<8x8x32xf32>
    %cst_21 = arith.constant dense<0.000000e+00> : vector<8x8x32xf32>
    %33 = tpu.matmul %31, %32, %cst_21 {dimension_numbers = #tpu.dot_dimension_numbers<[2], [1], [1], [2], [0, 0, 0, 1, 1, 2], [0], [0]>} : vector<8x8x8xf32>, vector<8x8x32xf32>, vector<8x8x32xf32> -> vector<8x8x32xf32>
    %c0_22 = arith.constant 0 : index
    %c0_23 = arith.constant 0 : index
    %c0_24 = arith.constant 0 : index
    %34 = vector.load %arg7[%c0_22, %c0_23, %c0_24] : memref<8x8x32xf32, #tpu.memory_space<vmem>>, vector<8x8x32xf32>
    tpu.vector_store %arg7[%c0_22, %c0_23, %c0_24], %33 {strides = array<i32>} : memref<8x8x32xf32, #tpu.memory_space<vmem>>, vector<8x8x32xf32>,
    return
  }
  func.func @transform_0(%arg0: i32, %arg1: i32) -> (i32, i32, i32) {
    %c0_i32 = arith.constant 0 : i32
    %c0_i32_0 = arith.constant 0 : i32
    return %arg0, %arg1, %c0_i32 : i32, i32, i32
  }
  func.func @transform_1(%arg0: i32, %arg1: i32) -> (i32, i32, i32) {
    %c0_i32 = arith.constant 0 : i32
    %c0_i32_0 = arith.constant 0 : i32
    %c0_i32_1 = arith.constant 0 : i32
    return %arg0, %c0_i32, %c0_i32_0 : i32, i32, i32
  }
  func.func @transform_2(%arg0: i32, %arg1: i32) -> (i32, i32, i32) {
    %c0_i32 = arith.constant 0 : i32
    %c0_i32_0 = arith.constant 0 : i32
    %c0_i32_1 = arith.constant 0 : i32
    return %arg0, %c0_i32, %c0_i32_0 : i32, i32, i32
  }
  func.func @transform_3(%arg0: i32, %arg1: i32) -> (i32, i32, i32) {
    %c0_i32 = arith.constant 0 : i32
    %c0_i32_0 = arith.constant 0 : i32
    return %arg0, %arg1, %c0_i32 : i32, i32, i32
  }
  func.func @transform_4(%arg0: i32, %arg1: i32) -> (i32, i32, i32) {
    %c0_i32 = arith.constant 0 : i32
    %c0_i32_0 = arith.constant 0 : i32
    return %arg0, %arg1, %c0_i32 : i32, i32, i32
  }
  func.func @transform_5(%arg0: i32, %arg1: i32) -> (i32, i32, i32) {
    %c0_i32 = arith.constant 0 : i32
    %c0_i32_0 = arith.constant 0 : i32
    return %arg0, %arg1, %c0_i32 : i32, i32, i32
  }
}

</mosaic_0001>

<bundles_post_ra>
// kernel: tpu_custom_call.1
= control target key start
LH: loop header
LB: loop body
LE: loop exit
PB: predicated region body
PF: predicated region fallthrough
CT: control target
= control target key end

     0   :  { %10 = vsyncpa [#allocation3], 0  ;;  %s2220_s0 = inlined_call_operand.hbm [shape: f32[8,8,32], index: 0, kind: input, shape index: {}]   ;;  %s2221_s1 = inlined_call_operand.hbm [shape: f32[8,8,32], index: 1, kind: input, shape index: {}]   ;;  %s2222_s2 = inlined_call_operand.hbm [shape: f32[8,8,32], index: 2, kind: input, shape index: {}]   ;;  %s2223_s3 = inlined_call_operand.hbm [shape: f32[8,8,8], index: 3, kind: input, shape index: {}]   ;;  %s2224_s4 = inlined_call_operand.hbm [shape: f32[8,8,8], index: 4, kind: input, shape index: {}]   ;;  %s2225_s5 = inlined_call_operand.hbm [shape: f32[8,8,32], index: 5, kind: output, shape index: {}]  }
   0x1   :  { %11 = vsyncpa [#allocation6], 0 }
   0x2   :  { %12 = vsyncpa [#allocation9], 0 }
   0x3   :  { %13 = vsyncpa [#allocation4], 0  ;;  %s1900_s18 = smov [#allocation5]   ;;  %s1901_s20 = smov [#allocation8]  }
   0x4   :  { %s31_s19 = sshll.u32 %s1900_s18, 4  ;;  %s55_s21 = sshll.u32 %s1901_s20, 4  ;;  %s32_s19 = int_to_ptr.vmem [resolvable:$true] %s31_s19  ;;  %s1940_s21 = int_to_ptr.vmem [resolvable:$true] %s55_s21 }
   0x5   :  { %s1760_s24 = scalar_lea.hbm %s2221_s1, 1024 }
   0x6   :  { %p1761_p0 = scmp.ne.s32.totalorder %s2221_s1, %s1760_s24  ;;  %p1764_p1 = scmp.lt.u32.totalorder %s1760_s24, %s2221_s1 }
   0x8   :  { %p1766_p2 = pnand %p1764_p1, %p1761_p0 }
   0xa   :  { %1769 = shalt.err (!%p1766_p2)
}
   0xb   :  { %s1770_s29 = scalar_lea.vmem %s32_s19, 1024  ;;  %p1775_p4 = scmp.lt.s32.totalorder %s32_s19, %s32_s19 }
   0xc   :  { %p1771_p3 = scmp.ne.s32.totalorder %s32_s19, %s1770_s29  ;;  %p1776_p5 = scmp.lt.s32.totalorder %s1770_s29, %s1770_s29 }
   0xe   :  { %p1777_p6 = por %p1776_p5, %p1775_p4 }
  0x10   :  { %p1778_p7 = pnand %p1777_p6, %p1771_p3 }
  0x12   :  { %1781 = shalt.err (!%p1778_p7)
}
  0x13   :  { %s1902_s30 = smov 128   ;;  %s1903_s6 = smov 8  }
  0x14   :  { %37 = dma.hbm_to_vmem [thread:$0]  %s2221_s1, 1024, %s32_s19, [#allocation6], %s1902_s30, %s1902_s30, %s1903_s6  }
  0x15   :  { %s1782_s11 = scalar_lea.hbm %s2223_s3, 1024 }
  0x16   :  { %p1783_p8 = scmp.ne.s32.totalorder %s2223_s3, %s1782_s11  ;;  %p1786_p9 = scmp.lt.u32.totalorder %s1782_s11, %s2223_s3 }
  0x18   :  { %p1788_p10 = pnand %p1786_p9, %p1783_p8 }
  0x1a   :  { %1791 = shalt.err (!%p1788_p10)
}
  0x1b   :  { %s1792_s16 = scalar_lea.vmem %s1940_s21, 1024  ;;  %p1797_p12 = scmp.lt.s32.totalorder %s1940_s21, %s1940_s21 }
  0x1c   :  { %p1793_p11 = scmp.ne.s32.totalorder %s1940_s21, %s1792_s16  ;;  %p1798_p13 = scmp.lt.s32.totalorder %s1792_s16, %s1792_s16 }
  0x1e   :  { %p1799_p0 = por %p1798_p13, %p1797_p12 }
  0x20   :  { %p1800_p1 = pnand %p1799_p0, %p1793_p11 }
  0x22   :  { %1803 = shalt.err (!%p1800_p1)
}
  0x23   :  { %61 = dma.hbm_to_vmem [thread:$0]  %s2223_s3, 1024, %s1940_s21, [#allocation9], %s1902_s30, %s1902_s30, %s1903_s6  }
  0x24   :  { %s1904_s18 = smov [#allocation2]   ;;  %s1905_s20 = smov [#allocation7]  }
  0x25   :  { %s19_s19 = sshll.u32 %s1904_s18, 4  ;;  %s43_s22 = sshll.u32 %s1905_s20, 4  ;;  %s20_s19 = int_to_ptr.vmem [resolvable:$true] %s19_s19  ;;  %s1977_s22 = int_to_ptr.vmem [resolvable:$true] %s43_s22 }
  0x26   :  { %s1804_s25 = scalar_lea.hbm %s2220_s0, 1024 }
  0x27   :  { %p1805_p2 = scmp.ne.s32.totalorder %s2220_s0, %s1804_s25  ;;  %p1808_p3 = scmp.lt.u32.totalorder %s1804_s25, %s2220_s0 }
  0x29   :  { %p1810_p4 = pnand %p1808_p3, %p1805_p2 }
  0x2b   :  { %1813 = shalt.err (!%p1810_p4)
}
  0x2c   :  { %s1814_s3 = scalar_lea.vmem %s20_s19, 1024  ;;  %p1819_p6 = scmp.lt.s32.totalorder %s20_s19, %s20_s19 }
  0x2d   :  { %p1815_p5 = scmp.ne.s32.totalorder %s20_s19, %s1814_s3  ;;  %p1820_p7 = scmp.lt.s32.totalorder %s1814_s3, %s1814_s3 }
  0x2f   :  { %p1821_p8 = por %p1820_p7, %p1819_p6 }
  0x31   :  { %p1822_p9 = pnand %p1821_p8, %p1815_p5 }
  0x33   :  { %1825 = shalt.err (!%p1822_p9)
}
  0x34   :  { %25 = dma.hbm_to_vmem [thread:$0]  %s2220_s0, 1024, %s20_s19, [#allocation3], %s1902_s30, %s1902_s30, %s1903_s6  }
  0x35   :  { %s1826_s10 = scalar_lea.hbm %s2222_s2, 1024 }
  0x36   :  { %p1827_p10 = scmp.ne.s32.totalorder %s2222_s2, %s1826_s10  ;;  %p1830_p11 = scmp.lt.u32.totalorder %s1826_s10, %s2222_s2 }
  0x38   :  { %p1832_p12 = pnand %p1830_p11, %p1827_p10 }
  0x3a   :  { %1835 = shalt.err (!%p1832_p12)
}
  0x3b   :  { %s1836_s15 = scalar_lea.vmem %s1977_s22, 1024  ;;  %p1841_p0 = scmp.lt.s32.totalorder %s1977_s22, %s1977_s22 }
  0x3c   :  { %p1837_p13 = scmp.ne.s32.totalorder %s1977_s22, %s1836_s15  ;;  %p1842_p1 = scmp.lt.s32.totalorder %s1836_s15, %s1836_s15 }
  0x3e   :  { %p1843_p2 = por %p1842_p1, %p1841_p0 }
  0x40   :  { %p1844_p3 = pnand %p1843_p2, %p1837_p13 }
  0x42   :  { %1847 = shalt.err (!%p1844_p3)
}
  0x43   :  { %49 = dma.hbm_to_vmem [thread:$0]  %s2222_s2, 1024, %s1977_s22, [#allocation6], %s1902_s30, %s1902_s30, %s1903_s6  }
  0x44   :  { %s1906_s1 = smov [#allocation10]   ;;  %s1848_s20 = scalar_lea.hbm %s2224_s4, 1024 }
  0x45   :  { %s67_s17 = sshll.u32 %s1906_s1, 4  ;;  %p1849_p4 = scmp.ne.s32.totalorder %s2224_s4, %s1848_s20  ;;  %s68_s17 = int_to_ptr.vmem [resolvable:$true] %s67_s17 }
  0x46   :  { %p1852_p5 = scmp.lt.u32.totalorder %s1848_s20, %s2224_s4 }
  0x48   :  { %p1854_p6 = pnand %p1852_p5, %p1849_p4 }
  0x4a   :  { %1857 = shalt.err (!%p1854_p6)
}
  0x4b   :  { %s1858_s27 = scalar_lea.vmem %s68_s17, 1024  ;;  %p1863_p8 = scmp.lt.s32.totalorder %s68_s17, %s68_s17 }
  0x4c   :  { %p1859_p7 = scmp.ne.s32.totalorder %s68_s17, %s1858_s27  ;;  %p1864_p9 = scmp.lt.s32.totalorder %s1858_s27, %s1858_s27 }
  0x4e   :  { %p1865_p10 = por %p1864_p9, %p1863_p8 }
  0x50   :  { %p1866_p11 = pnand %p1865_p10, %p1859_p7 }
  0x52   :  { %1869 = shalt.err (!%p1866_p11)
}
  0x53   :  { %73 = dma.hbm_to_vmem [thread:$0]  %s2224_s4, 1024, %s68_s17, [#allocation9], %s1902_s30, %s1902_s30, %s1903_s6  }
  0x54   :  { %1892 = dma.done.wait [#allocation3], 1024  }
  0x55   :  { %1893 = vsyncadd [#allocation3], 4294966272 }
  0x56   :  { %1894 = dma.done.wait [#allocation6], 2048  }
  0x57   :  { %1895 = vsyncadd [#allocation6], 4294965248 }
  0x58   :  { %1896 = dma.done.wait [#allocation9], 2048  }
  0x59   :  { %1897 = vsyncadd [#allocation9], 4294965248  ;;  %v1907_v0 = vmov 0.0   ;;  %vm1908_vm0 = vmmov 0   ;;  %v113_v1 = vld [vmem:[#allocation10] sm:$0xff]  ;;  %vm145_vm1 = vcmask 64512  }
  0x5a   :  { %1606 = vmatprep.subr.mxu0 %v1907_v0  ;;  %1608 = vmatprep.mubr.msk.f32.mxu0 %vm1908_vm0, %v1907_v0  ;;  %v129_v2 = vld [vmem:[#allocation8] sm:$0xff]  ;;  %v115_v3 = vld [vmem:[#allocation10 + $0x10] sm:$0xff]  ;;  %vm121_vm2 = vcmp.eq.f32.partialorder %v113_v1, 0.0  ;;  %v114_v5 = vld [vmem:[#allocation10 + $0x8] sm:$0xff]  ;;  %vm234_vm4 = vcmask 261120   ;;  %s1909_s4 = smov [#allocation11]  }
  0x5b   :  { %1611 = vmatprep.subr.mxu1 %v1907_v0  ;;  %1613 = vmatprep.mubr.msk.f32.mxu1 %vm1908_vm0, %v1907_v0  ;;  %vm123_vm3 = vcmp.eq.f32.partialorder %v115_v3, 0.0  ;;  %v131_v4 = vld [vmem:[#allocation8 + $0x10] sm:$0xff]  ;;  %v130_v6 = vld [vmem:[#allocation8 + $0x8] sm:$0xff]  ;;  %v2035_v7 = vsel %vm121_vm2, -1e+09, %v129_v2  ;;  %vm122_vm5 = vcmp.eq.f32.partialorder %v114_v5, 0.0 }
  0x5c   :  { %v2037_v8 = vsel %vm123_vm3, -1e+09, %v131_v4  ;;  %v116_v9 = vld [vmem:[#allocation10 + $0x18] sm:$0xff]  ;;  %v146_v10 = vsel %vm145_vm1, %v2035_v7, -inf  ;;  %v2043_v12 = vsel %vm122_vm5, -1e+09, %v130_v6 }
  0x5d   :  { %v152_v11 = vsel %vm145_vm1, %v2037_v8, -inf  ;;  %vm124_vm6 = vcmp.eq.f32.partialorder %v116_v9, 0.0  ;;  %v132_v13 = vld [vmem:[#allocation8 + $0x18] sm:$0xff]  ;;  %147 = vmax.xlane.f32.xlu0 %v146_v10  ;;  %v149_v14 = vsel %vm145_vm1, %v2043_v12, -inf  ;;  %v117_v16 = vld [vmem:[#allocation10 + $0x20] sm:$0xff]  ;;  %v118_v18 = vld [vmem:[#allocation10 + $0x28] sm:$0xff] }
  0x5e   :  { %153 = vmax.xlane.f32.xlu1 %v152_v11  ;;  %v2047_v15 = vsel %vm124_vm6, -1e+09, %v132_v13  ;;  %v133_v17 = vld [vmem:[#allocation8 + $0x20] sm:$0xff]  ;;  %vm125_vm7 = vcmp.eq.f32.partialorder %v117_v16, 0.0  ;;  %vm126_vm8 = vcmp.eq.f32.partialorder %v118_v18, 0.0  ;;  %v134_v20 = vld [vmem:[#allocation8 + $0x28] sm:$0xff] }
  0x5f   :  { %v155_v19 = vsel %vm145_vm1, %v2047_v15, -inf  ;;  %v119_v21 = vld [vmem:[#allocation10 + $0x30] sm:$0xff]  ;;  %v2051_v23 = vsel %vm125_vm7, -1e+09, %v133_v17  ;;  %v2053_v24 = vsel %vm126_vm8, -1e+09, %v134_v20 }
  0x60   :  { %v135_v22 = vld [vmem:[#allocation8 + $0x30] sm:$0xff]  ;;  %vm127_vm9 = vcmp.eq.f32.partialorder %v119_v21, 0.0  ;;  %v120_v25 = vld [vmem:[#allocation10 + $0x38] sm:$0xff]  ;;  %v158_v27 = vsel %vm145_vm1, %v2051_v23, -inf  ;;  %v105_v28 = vld [vmem:[#allocation5] sm:$0xff]  ;;  %v161_v31 = vsel %vm145_vm1, %v2053_v24, -inf }
  0x61   :  { %vm128_vm10 = vcmp.eq.f32.partialorder %v120_v25, 0.0  ;;  %v136_v26 = vld [vmem:[#allocation8 + $0x38] sm:$0xff]  ;;  %150 = vmax.xlane.f32.xlu0 %v149_v14  ;;  %v89_v29 = vld [vmem:[#allocation2] sm:$0xff]  ;;  %v106_v30 = vld [vmem:[#allocation5 + $0x8] sm:$0xff]  ;;  %v2059_v32 = vsel %vm127_vm9, -1e+09, %v135_v22  ;;  %1607 = vmatpush3.xpose.msk.msra.mxu0 %vm234_vm4, %v105_v28 }
  0x62   :  { %156 = vmax.xlane.f32.xlu1 %v155_v19  ;;  %v97_v33 = vmul.f32 0.17677669, %v89_v29  ;;  %1612 = vmatpush3.xpose.msk.msra.mxu1 %vm234_vm4, %v106_v30  ;;  %v90_v34 = vld [vmem:[#allocation2 + $0x8] sm:$0xff]  ;;  %v2063_v35 = vsel %vm128_vm10, -1e+09, %v136_v26  ;;  %v91_v37 = vld [vmem:[#allocation2 + $0x10] sm:$0xff] }
  0x63   :  { %1616 = vmatprep.subr.mxu0 %v1907_v0  ;;  %v98_v36 = vmul.f32 0.17677669, %v90_v34  ;;  %1621 = vmatprep.subr.mxu1 %v1907_v0  ;;  %v107_v38 = vld [vmem:[#allocation5 + $0x10] sm:$0xff]  ;;  %v92_v39 = vld [vmem:[#allocation2 + $0x18] sm:$0xff]  ;;  %v164_v41 = vsel %vm145_vm1, %v2059_v32, -inf  ;;  %v167_v42 = vsel %vm145_vm1, %v2063_v35, -inf }
  0x64   :  { %v108_v40 = vld [vmem:[#allocation5 + $0x18] sm:$0xff]  ;;  %1609 = vmatmul.mubr.msk.f32.vlgmr.msra.gmra.mrb[0].mxu0 %vm234_vm4, %v97_v33  ;;  %v99_v43 = vmul.f32 0.17677669, %v91_v37  ;;  %v100_v44 = vmul.f32 0.17677669, %v92_v39  ;;  %v93_v45 = vld [vmem:[#allocation2 + $0x20] sm:$0xff] }
  0x65   :  { %159 = vmax.xlane.f32.xlu0 %v158_v27  ;;  %1614 = vmatmul.mubr.msk.f32.vlgmr.msra.gmra.mrb[0].mxu1 %vm234_vm4, %v98_v36  ;;  %v109_v46 = vld [vmem:[#allocation5 + $0x20] sm:$0xff]  ;;  %v94_v47 = vld [vmem:[#allocation2 + $0x28] sm:$0xff]  ;;  %v101_v48 = vmul.f32 0.17677669, %v93_v45  ;;  %v95_v50 = vld [vmem:[#allocation2 + $0x30] sm:$0xff]  ;;  %s1536_s28 = sshll.u32 %s1909_s4, 4  ;;  %s1537_s28 = int_to_ptr.vmem [resolvable:$true] %s1536_s28 }
  0x66   :  { %162 = vmax.xlane.f32.xlu1 %v161_v31  ;;  %1617 = vmatpush3.xpose.msk.msra.mxu0 %vm234_vm4, %v107_v38  ;;  %v110_v49 = vld [vmem:[#allocation5 + $0x28] sm:$0xff]  ;;  %v111_v51 = vld [vmem:[#allocation5 + $0x30] sm:$0xff]  ;;  %v102_v52 = vmul.f32 0.17677669, %v94_v47  ;;  %v96_v53 = vld [vmem:[#allocation2 + $0x38] sm:$0xff]  ;;  %s1870_s29 = scalar_lea.vmem %s1537_s28, 1024  ;;  %p1875_p13 = scmp.lt.s32.totalorder %s1537_s28, %s1537_s28 }
  0x67   :  { %1618 = vmatprep.mubr.msk.f32.mxu0 %vm1908_vm0, %v1907_v0  ;;  %1622 = vmatpush3.xpose.msk.msra.mxu1 %vm234_vm4, %v108_v40  ;;  %v103_v54 = vmul.f32 0.17677669, %v95_v50  ;;  %v112_v55 = vld [vmem:[#allocation5 + $0x38] sm:$0xff]  ;;  %v104_v56 = vmul.f32 0.17677669, %v96_v53  ;;  %p1871_p12 = scmp.ne.s32.totalorder %s1537_s28, %s1870_s29  ;;  %p1876_p0 = scmp.lt.s32.totalorder %s1870_s29, %s1870_s29 }
  0x68   :  { %1626 = vmatprep.subr.mxu0 %v1907_v0  ;;  %1623 = vmatprep.mubr.msk.f32.mxu1 %vm1908_vm0, %v1907_v0 }
  0x69   :  { %165 = vmax.xlane.f32.xlu0 %v164_v41  ;;  %1619 = vmatmul.mubr.msk.f32.vlgmr.msra.gmra.mrb[2].mxu0 %vm234_vm4, %v99_v43  ;;  %p1877_p1 = por %p1876_p0, %p1875_p13 }
  0x6a   :  { %168 = vmax.xlane.f32.xlu1 %v167_v42  ;;  %1627 = vmatpush3.xpose.msk.msra.mxu0 %vm234_vm4, %v109_v46 }
  0x6b   :  { %1624 = vmatmul.mubr.msk.f32.vlgmr.msra.gmra.mrb[2].mxu1 %vm234_vm4, %v100_v44  ;;  %1628 = vmatprep.mubr.msk.f32.mxu0 %vm1908_vm0, %v1907_v0  ;;  %p1878_p2 = pnand %p1877_p1, %p1871_p12 }
  0x6c   :  { %1631 = vmatprep.subr.mxu1 %v1907_v0  ;;  %1636 = vmatprep.subr.mxu0 %v1907_v0 }
  0x6d   :  { %1632 = vmatpush3.xpose.msk.msra.mxu1 %vm234_vm4, %v110_v49  ;;  %1629 = vmatmul.mubr.msk.f32.vlgmr.msra.gmra.mrb[4].mxu0 %vm234_vm4, %v101_v48 }
  0x6e   :  { %1633 = vmatprep.mubr.msk.f32.mxu1 %vm1908_vm0, %v1907_v0  ;;  %1637 = vmatpush3.xpose.msk.msra.mxu0 %vm234_vm4, %v111_v51 }
  0x6f   :  { %1638 = vmatprep.mubr.msk.f32.mxu0 %vm1908_vm0, %v1907_v0  ;;  %1641 = vmatprep.subr.mxu1 %v1907_v0 }
  0x70   :  { %1634 = vmatmul.mubr.msk.f32.vlgmr.msra.gmra.mrb[4].mxu1 %vm234_vm4, %v102_v52  ;;  %1646 = vmatprep.subr.mxu0 %v1907_v0 }
  0x71   :  { %1642 = vmatpush3.xpose.msk.msra.mxu1 %vm234_vm4, %v112_v55  ;;  %1643 = vmatprep.mubr.msk.f32.mxu1 %vm1908_vm0, %v1907_v0 }
  0x72   :  { %1639 = vmatmul.mubr.msk.f32.vlgmr.msra.gmra.mrb[6].mxu0 %vm234_vm4, %v103_v54  ;;  %1651 = vmatprep.subr.mxu1 %v1907_v0 }
  0x73   :  { %1648 = vmatprep.mubr.msk.f32.mxu0 %vm1908_vm0, %v1907_v0 }
  0x74   :  { %1644 = vmatmul.mubr.msk.f32.vlgmr.msra.gmra.mrb[6].mxu1 %vm234_vm4, %v104_v56 }
  0x75   :  { %1653 = vmatprep.mubr.msk.f32.mxu1 %vm1908_vm0, %v1907_v0 }
  0xea   :  { %v148_v57 = vpop.xlane.xlu0 %147 }
  0xeb   :  { %v154_v58 = vpop.xlane.xlu1 %153  ;;  %v170_v59 = vsub.f32 %v2035_v7, %v148_v57 }
  0xec   :  { %v172_v60 = vsub.f32 %v2037_v8, %v154_v58 }
  0xed   :  { %v178_v61 = vmul.f32 1.442695, %v170_v59 }
  0xee   :  { %v182_v62 = vmul.f32 1.442695, %v172_v60  ;;  %v151_v63 = vpop.xlane.xlu0 %150 }
  0xef   :  { %v157_v1 = vpop.xlane.xlu1 %156  ;;  %1696 = vpow2.f32 %v178_v61  ;;  %v171_v2 = vsub.f32 %v2043_v12, %v151_v63 }
  0xf0   :  { %v173_v3 = vsub.f32 %v2047_v15, %v157_v1  ;;  %1698 = vpow2.f32 %v182_v62 }
  0xf1   :  { %v180_v4 = vmul.f32 1.442695, %v171_v2 }
  0xf2   :  { %v184_v5 = vmul.f32 1.442695, %v173_v3  ;;  %v160_v6 = vpop.xlane.xlu0 %159 }
  0xf3   :  { %v163_v9 = vpop.xlane.xlu1 %162  ;;  %1700 = vpow2.f32 %v180_v4  ;;  %v174_v10 = vsub.f32 %v2051_v23, %v160_v6 }
  0xf4   :  { %v175_v7 = vsub.f32 %v2053_v24, %v163_v9  ;;  %1702 = vpow2.f32 %v184_v5 }
  0xf5   :  { %v186_v8 = vmul.f32 1.442695, %v174_v10 }
  0xf6   :  { %v188_v11 = vmul.f32 1.442695, %v175_v7  ;;  %v166_v13 = vpop.xlane.xlu0 %165 }
  0xf7   :  { %v169_v14 = vpop.xlane.xlu1 %168  ;;  %1704 = vpow2.f32 %v186_v8  ;;  %v176_v12 = vsub.f32 %v2059_v32, %v166_v13 }
  0xf8   :  { %v177_v15 = vsub.f32 %v2063_v35, %v169_v14  ;;  %1706 = vpow2.f32 %v188_v11 }
  0xf9   :  { %v1697_v16 = vpop.eup %1696  ;;  %v190_v17 = vmul.f32 1.442695, %v176_v12 }
  0xfa   :  { %v192_v18 = vmul.f32 1.442695, %v177_v15  ;;  %v2115_v19 = vpop.eup %1698  ;;  %v194_v20 = vsel %vm145_vm1, %v1697_v16, 0.0 }
  0xfb   :  { %1708 = vpow2.f32 %v190_v17  ;;  %195 = vadd.xlane.f32.xlu0 %v194_v20  ;;  %v200_v21 = vsel %vm145_vm1, %v2115_v19, 0.0 }
  0xfc   :  { %1710 = vpow2.f32 %v192_v18 }
  0xfd   :  { %v1701_v22 = vpop.eup %1700 }
  0xfe   :  { %v2120_v23 = vpop.eup %1702  ;;  %v197_v24 = vsel %vm145_vm1, %v1701_v22, 0.0 }
  0xff   :  { %201 = vadd.xlane.f32.xlu0 %v200_v21  ;;  %198 = vadd.xlane.f32.xlu1 %v197_v24  ;;  %v203_v25 = vsel %vm145_vm1, %v2120_v23, 0.0 }
 0x101   :  { %v1705_v26 = vpop.eup %1704 }
 0x102   :  { %v2125_v27 = vpop.eup %1706  ;;  %v206_v28 = vsel %vm145_vm1, %v1705_v26, 0.0 }
 0x103   :  { %204 = vadd.xlane.f32.xlu1 %v203_v25  ;;  %207 = vadd.xlane.f32.xlu0 %v206_v28  ;;  %v209_v29 = vsel %vm145_vm1, %v2125_v27, 0.0 }
 0x105   :  { %v2130_v30 = vpop.eup %1708 }
 0x106   :  { %v2132_v31 = vpop.eup %1710  ;;  %v212_v32 = vsel %vm145_vm1, %v2130_v30, 0.0 }
 0x107   :  { %210 = vadd.xlane.f32.xlu1 %v209_v29  ;;  %213 = vadd.xlane.f32.xlu0 %v212_v32  ;;  %v215_v33 = vsel %vm145_vm1, %v2132_v31, 0.0 }
 0x10b   :  { %216 = vadd.xlane.f32.xlu1 %v215_v33 }
 0x137   :  { %v307_v34 = vpop.f32.mrb[0].mxu0 }
 0x138   :  { %v383_v35 = vpop.f32.mrb[0].mxu1  ;;  %v1610_v36 = vpop.f32.mrb[1].mxu0 }
 0x139   :  { %v1615_v37 = vpop.f32.mrb[1].mxu1 }
 0x13c   :  { %v459_v38 = vpop.f32.mrb[2].mxu0 }
 0x13d   :  { %v1620_v39 = vpop.f32.mrb[3].mxu0 }
 0x13e   :  { %v535_v40 = vpop.f32.mrb[2].mxu1 }
 0x13f   :  { %v1625_v41 = vpop.f32.mrb[3].mxu1 }
 0x140   :  { %v611_v42 = vpop.f32.mrb[4].mxu0 }
 0x141   :  { %v1630_v43 = vpop.f32.mrb[5].mxu0 }
 0x143   :  { %v687_v44 = vpop.f32.mrb[4].mxu1 }
 0x144   :  { %v1635_v45 = vpop.f32.mrb[5].mxu1 }
 0x145   :  { %v763_v46 = vpop.f32.mrb[6].mxu0 }
 0x146   :  { %v1640_v47 = vpop.f32.mrb[7].mxu0 }
 0x147   :  { %v839_v48 = vpop.f32.mrb[6].mxu1 }
 0x148   :  { %v1645_v49 = vpop.f32.mrb[7].mxu1 }
 0x188   :  { %v196_v50 = vpop.xlane.xlu0 %195 }
 0x189   :  { %1712 = vrcp.f32 %v196_v50 }
 0x18c   :  { %v199_v51 = vpop.xlane.xlu1 %198  ;;  %v202_v52 = vpop.xlane.xlu0 %201 }
 0x18d   :  { %1714 = vrcp.f32 %v199_v51 }
 0x18e   :  { %1716 = vrcp.f32 %v202_v52 }
 0x190   :  { %v205_v53 = vpop.xlane.xlu1 %204  ;;  %v208_v54 = vpop.xlane.xlu0 %207 }
 0x191   :  { %1718 = vrcp.f32 %v205_v53 }
 0x192   :  { %1720 = vrcp.f32 %v208_v54 }
 0x193   :  { %v1713_v55 = vpop.eup %1712 }
 0x194   :  { %v211_v56 = vpop.xlane.xlu1 %210  ;;  %v214_v57 = vpop.xlane.xlu0 %213  ;;  %v226_v58 = vmul.f32 %v1713_v55, %v1697_v16 }
 0x195   :  { %1722 = vrcp.f32 %v211_v56 }
 0x196   :  { %1724 = vrcp.f32 %v214_v57  ;;  %v308_v59 = vadd.f32 %v307_v34, %v226_v58 }
 0x197   :  { %v1715_v60 = vpop.eup %1714 }
 0x198   :  { %v1717_v61 = vpop.eup %1716  ;;  %v217_v62 = vpop.xlane.xlu1 %216  ;;  %v227_v63 = vmul.f32 %v1715_v60, %v1701_v22  ;;  %v843_v1 = vsel %vm145_vm1, %v308_v59, -inf }
 0x199   :  { %1726 = vrcp.f32 %v217_v62  ;;  %844 = vmax.xlane.f32.xlu0 %v843_v1  ;;  %v228_v2 = vmul.f32 %v1717_v61, %v2115_v19 }
 0x19a   :  { %v384_v3 = vadd.f32 %v383_v35, %v227_v63 }
 0x19b   :  { %v1719_v4 = vpop.eup %1718  ;;  %v460_v5 = vadd.f32 %v459_v38, %v228_v2 }
 0x19c   :  { %v1721_v6 = vpop.eup %1720  ;;  %v229_v9 = vmul.f32 %v1719_v4, %v2120_v23  ;;  %v846_v10 = vsel %vm145_vm1, %v384_v3, -inf  ;;  %v931_v4 = vld [vmem:[#allocation7] sm:$0xff] }
 0x19d   :  { %847 = vmax.xlane.f32.xlu1 %v846_v10  ;;  %v849_v7 = vsel %vm145_vm1, %v460_v5, -inf  ;;  %v230_v8 = vmul.f32 %v1721_v6, %v1705_v26  ;;  %1647 = vmatpush3.msra.mxu0 %v931_v4 }
 0x19e   :  { %v536_v11 = vadd.f32 %v535_v40, %v229_v9  ;;  %850 = vmax.xlane.f32.xlu0 %v849_v7  ;;  %1656 = vmatprep.subr.mxu0 %v1907_v0 }
 0x19f   :  { %v1723_v13 = vpop.eup %1722  ;;  %v612_v14 = vadd.f32 %v611_v42, %v230_v8 }
 0x1a0   :  { %v1725_v12 = vpop.eup %1724  ;;  %v231_v15 = vmul.f32 %v1723_v13, %v2125_v27  ;;  %v852_v16 = vsel %vm145_vm1, %v536_v11, -inf }
 0x1a1   :  { %853 = vmax.xlane.f32.xlu1 %v852_v16  ;;  %v855_v17 = vsel %vm145_vm1, %v612_v14, -inf  ;;  %v232_v18 = vmul.f32 %v1725_v12, %v2130_v30  ;;  %v933_v12 = vld [vmem:[#allocation7 + $0x10] sm:$0xff] }
 0x1a2   :  { %v688_v19 = vadd.f32 %v687_v44, %v231_v15  ;;  %856 = vmax.xlane.f32.xlu0 %v855_v17 }
 0x1a3   :  { %v1727_v20 = vpop.eup %1726  ;;  %v764_v21 = vadd.f32 %v763_v46, %v232_v18 }
 0x1a4   :  { %v233_v22 = vmul.f32 %v1727_v20, %v2132_v31  ;;  %v858_v23 = vsel %vm145_vm1, %v688_v19, -inf  ;;  %v934_v20 = vld [vmem:[#allocation7 + $0x18] sm:$0xff] }
 0x1a5   :  { %859 = vmax.xlane.f32.xlu1 %v858_v23  ;;  %v861_v24 = vsel %vm145_vm1, %v764_v21, -inf }
 0x1a6   :  { %v840_v25 = vadd.f32 %v839_v48, %v233_v22  ;;  %862 = vmax.xlane.f32.xlu0 %v861_v24  ;;  %v935_v22 = vld [vmem:[#allocation7 + $0x20] sm:$0xff] }
 0x1a8   :  { %v864_v26 = vsel %vm145_vm1, %v840_v25, -inf }
 0x1a9   :  { %865 = vmax.xlane.f32.xlu1 %v864_v26  ;;  %v936_v26 = vld [vmem:[#allocation7 + $0x28] sm:$0xff] }
 0x226   :  { %v845_v27 = vpop.xlane.xlu0 %844 }
 0x227   :  { %v867_v28 = vsub.f32 %v308_v59, %v845_v27 }
 0x229   :  { %v875_v29 = vmul.f32 1.442695, %v867_v28  ;;  %v937_v28 = vld [vmem:[#allocation7 + $0x30] sm:$0xff] }
 0x22a   :  { %v848_v30 = vpop.xlane.xlu1 %847 }
 0x22b   :  { %1728 = vpow2.f32 %v875_v29  ;;  %v868_v32 = vsub.f32 %v384_v3, %v848_v30  ;;  %v851_v33 = vpop.xlane.xlu0 %850 }
 0x22c   :  { %v869_v34 = vsub.f32 %v460_v5, %v851_v33  ;;  %v932_v5 = vld [vmem:[#allocation7 + $0x8] sm:$0xff]  ;;  %v938_v33 = vld [vmem:[#allocation7 + $0x38] sm:$0xff] }
 0x22d   :  { %v877_v35 = vmul.f32 1.442695, %v868_v32  ;;  %1652 = vmatpush3.msra.mxu1 %v932_v5 }
 0x22e   :  { %v879_v31 = vmul.f32 1.442695, %v869_v34  ;;  %v854_v36 = vpop.xlane.xlu1 %853  ;;  %1661 = vmatprep.subr.mxu1 %v1907_v0 }
 0x22f   :  { %1730 = vpow2.f32 %v877_v35  ;;  %v870_v37 = vsub.f32 %v536_v11, %v854_v36  ;;  %v857_v38 = vpop.xlane.xlu0 %856 }
 0x230   :  { %1732 = vpow2.f32 %v879_v31  ;;  %v871_v39 = vsub.f32 %v612_v14, %v857_v38 }
 0x231   :  { %v881_v40 = vmul.f32 1.442695, %v870_v37 }
 0x232   :  { %v883_v41 = vmul.f32 1.442695, %v871_v39  ;;  %v860_v42 = vpop.xlane.xlu1 %859 }
 0x233   :  { %1734 = vpow2.f32 %v881_v40  ;;  %v872_v43 = vsub.f32 %v688_v19, %v860_v42  ;;  %v863_v44 = vpop.xlane.xlu0 %862 }
 0x234   :  { %1736 = vpow2.f32 %v883_v41  ;;  %v873_v45 = vsub.f32 %v764_v21, %v863_v44 }
 0x235   :  { %v1729_v46 = vpop.eup %1728  ;;  %v885_v47 = vmul.f32 1.442695, %v872_v43 }
 0x236   :  { %v887_v48 = vmul.f32 1.442695, %v873_v45  ;;  %v866_v49 = vpop.xlane.xlu1 %865  ;;  %v891_v50 = vsel %vm145_vm1, %v1729_v46, 0.0 }
 0x237   :  { %1738 = vpow2.f32 %v885_v47  ;;  %v874_v51 = vsub.f32 %v840_v25, %v866_v49  ;;  %892 = vadd.xlane.f32.xlu0 %v891_v50 }
 0x238   :  { %1740 = vpow2.f32 %v887_v48 }
 0x239   :  { %v1731_v52 = vpop.eup %1730  ;;  %v889_v53 = vmul.f32 1.442695, %v874_v51 }
 0x23a   :  { %v1733_v54 = vpop.eup %1732  ;;  %v894_v55 = vsel %vm145_vm1, %v1731_v52, 0.0 }
 0x23b   :  { %1742 = vpow2.f32 %v889_v53  ;;  %895 = vadd.xlane.f32.xlu1 %v894_v55  ;;  %v897_v56 = vsel %vm145_vm1, %v1733_v54, 0.0 }
 0x23c   :  { %898 = vadd.xlane.f32.xlu0 %v897_v56 }
 0x23d   :  { %v1735_v57 = vpop.eup %1734 }
 0x23e   :  { %v1737_v58 = vpop.eup %1736  ;;  %v900_v59 = vsel %vm145_vm1, %v1735_v57, 0.0 }
 0x23f   :  { %901 = vadd.xlane.f32.xlu1 %v900_v59  ;;  %v903_v60 = vsel %vm145_vm1, %v1737_v58, 0.0 }
 0x240   :  { %904 = vadd.xlane.f32.xlu0 %v903_v60 }
 0x241   :  { %v2156_v61 = vpop.eup %1738 }
 0x242   :  { %v2158_v62 = vpop.eup %1740  ;;  %v906_v63 = vsel %vm145_vm1, %v2156_v61, 0.0 }
 0x243   :  { %907 = vadd.xlane.f32.xlu1 %v906_v63  ;;  %v909_v1 = vsel %vm145_vm1, %v2158_v62, 0.0 }
 0x244   :  { %910 = vadd.xlane.f32.xlu0 %v909_v1 }
 0x245   :  { %v2164_v2 = vpop.eup %1742 }
 0x246   :  { %v912_v3 = vsel %vm145_vm1, %v2164_v2, 0.0 }
 0x247   :  { %913 = vadd.xlane.f32.xlu1 %v912_v3 }
 0x2c4   :  { %v893_v6 = vpop.xlane.xlu0 %892 }
 0x2c5   :  { %1744 = vrcp.f32 %v893_v6 }
 0x2c8   :  { %v896_v9 = vpop.xlane.xlu1 %895 }
 0x2c9   :  { %1746 = vrcp.f32 %v896_v9  ;;  %v899_v10 = vpop.xlane.xlu0 %898 }
 0x2ca   :  { %1748 = vrcp.f32 %v899_v10 }
 0x2cc   :  { %v902_v7 = vpop.xlane.xlu1 %901 }
 0x2cd   :  { %1750 = vrcp.f32 %v902_v7  ;;  %v905_v8 = vpop.xlane.xlu0 %904 }
 0x2ce   :  { %1752 = vrcp.f32 %v905_v8 }
 0x2cf   :  { %v1745_v11 = vpop.eup %1744 }
 0x2d0   :  { %v923_v13 = vmul.f32 %v1745_v11, %v1729_v46  ;;  %v908_v14 = vpop.xlane.xlu1 %907 }
 0x2d1   :  { %1754 = vrcp.f32 %v908_v14  ;;  %v911_v15 = vpop.xlane.xlu0 %910 }
 0x2d2   :  { %1756 = vrcp.f32 %v911_v15  ;;  %1649 = vmatmul.mubr.msk.f32.vlgmr.msra.gmra.mrb[8].mxu0 %vm145_vm1, %v923_v13 }
 0x2d3   :  { %v1747_v16 = vpop.eup %1746  ;;  %1657 = vmatpush3.msra.mxu0 %v933_v12  ;;  %1658 = vmatprep.mubr.msk.f32.mxu0 %vm1908_vm0, %v1907_v0 }
 0x2d4   :  { %v1749_v17 = vpop.eup %1748  ;;  %v924_v18 = vmul.f32 %v1747_v16, %v1731_v52  ;;  %v914_v19 = vpop.xlane.xlu1 %913  ;;  %1666 = vmatprep.subr.mxu0 %v1907_v0 }
 0x2d5   :  { %v925_v21 = vmul.f32 %v1749_v17, %v1733_v54  ;;  %1758 = vrcp.f32 %v914_v19 }
 0x2d6   :  { %1654 = vmatmul.mubr.msk.f32.vlgmr.msra.gmra.mrb[8].mxu1 %vm145_vm1, %v924_v18 }
 0x2d7   :  { %v1751_v23 = vpop.eup %1750  ;;  %1659 = vmatmul.mubr.msk.f32.vlgmr.msra.gmra.mrb[10].mxu0 %vm145_vm1, %v925_v21  ;;  %1662 = vmatpush3.msra.mxu1 %v934_v20 }
 0x2d8   :  { %v1753_v24 = vpop.eup %1752  ;;  %v926_v25 = vmul.f32 %v1751_v23, %v1735_v57  ;;  %1663 = vmatprep.mubr.msk.f32.mxu1 %vm1908_vm0, %v1907_v0  ;;  %1667 = vmatpush3.msra.mxu0 %v935_v22 }
 0x2d9   :  { %v927_v27 = vmul.f32 %v1753_v24, %v1737_v58  ;;  %1668 = vmatprep.mubr.msk.f32.mxu0 %vm1908_vm0, %v1907_v0  ;;  %1671 = vmatprep.subr.mxu1 %v1907_v0 }
 0x2da   :  { %1664 = vmatmul.mubr.msk.f32.vlgmr.msra.gmra.mrb[10].mxu1 %vm145_vm1, %v926_v25  ;;  %1676 = vmatprep.subr.mxu0 %v1907_v0 }
 0x2db   :  { %v1755_v29 = vpop.eup %1754  ;;  %1669 = vmatmul.mubr.msk.f32.vlgmr.msra.gmra.mrb[12].mxu0 %vm145_vm1, %v927_v27  ;;  %1672 = vmatpush3.msra.mxu1 %v936_v26 }
 0x2dc   :  { %v1757_v30 = vpop.eup %1756  ;;  %v928_v32 = vmul.f32 %v1755_v29, %v2156_v61  ;;  %1673 = vmatprep.mubr.msk.f32.mxu1 %vm1908_vm0, %v1907_v0  ;;  %1677 = vmatpush3.msra.mxu0 %v937_v28 }
 0x2dd   :  { %v929_v34 = vmul.f32 %v1757_v30, %v2158_v62  ;;  %1678 = vmatprep.mubr.msk.f32.mxu0 %vm1908_vm0, %v1907_v0  ;;  %1681 = vmatprep.subr.mxu1 %v1907_v0 }
 0x2de   :  { %1674 = vmatmul.mubr.msk.f32.vlgmr.msra.gmra.mrb[12].mxu1 %vm145_vm1, %v928_v32 }
 0x2df   :  { %v1759_v35 = vpop.eup %1758  ;;  %1679 = vmatmul.mubr.msk.f32.vlgmr.msra.gmra.mrb[14].mxu0 %vm145_vm1, %v929_v34  ;;  %1682 = vmatpush3.msra.mxu1 %v938_v33 }
 0x2e0   :  { %v930_v31 = vmul.f32 %v1759_v35, %v2164_v2  ;;  %1683 = vmatprep.mubr.msk.f32.mxu1 %vm1908_vm0, %v1907_v0 }
 0x2e2   :  { %1684 = vmatmul.mubr.msk.f32.vlgmr.msra.gmra.mrb[14].mxu1 %vm145_vm1, %v930_v31 }
 0x3a5   :  { %v1008_v36 = vpop.f32.mrb[8].mxu0 }
 0x3a6   :  { %1523 = vst.msk [vmem:[#allocation11] sm:$0xff] %vm234_vm4, %v1008_v36  ;;  %v1650_v37 = vpop.f32.mrb[9].mxu0 }
 0x3a9   :  { %v1081_v38 = vpop.f32.mrb[8].mxu1 }
 0x3aa   :  { %1524 = vst.msk [vmem:[#allocation11 + $0x8] sm:$0xff] %vm234_vm4, %v1081_v38  ;;  %v1154_v39 = vpop.f32.mrb[10].mxu0  ;;  %v1655_v40 = vpop.f32.mrb[9].mxu1 }
 0x3ab   :  { %1525 = vst.msk [vmem:[#allocation11 + $0x10] sm:$0xff] %vm234_vm4, %v1154_v39  ;;  %v1660_v41 = vpop.f32.mrb[11].mxu0 }
 0x3ad   :  { %v1227_v42 = vpop.f32.mrb[10].mxu1 }
 0x3ae   :  { %1526 = vst.msk [vmem:[#allocation11 + $0x18] sm:$0xff] %vm234_vm4, %v1227_v42  ;;  %v1300_v43 = vpop.f32.mrb[12].mxu0  ;;  %v1665_v44 = vpop.f32.mrb[11].mxu1 }
 0x3af   :  { %1527 = vst.msk [vmem:[#allocation11 + $0x20] sm:$0xff] %vm234_vm4, %v1300_v43  ;;  %v1670_v0 = vpop.f32.mrb[13].mxu0 }
 0x3b1   :  { %v1373_v45 = vpop.f32.mrb[12].mxu1 }
 0x3b2   :  { %1528 = vst.msk [vmem:[#allocation11 + $0x28] sm:$0xff] %vm234_vm4, %v1373_v45  ;;  %v1446_v46 = vpop.f32.mrb[14].mxu0  ;;  %v1675_v47 = vpop.f32.mrb[13].mxu1 }
 0x3b3   :  { %1529 = vst.msk [vmem:[#allocation11 + $0x30] sm:$0xff] %vm234_vm4, %v1446_v46  ;;  %v1680_v48 = vpop.f32.mrb[15].mxu0 }
 0x3b5   :  { %v1519_v49 = vpop.f32.mrb[14].mxu1 }
 0x3b6   :  { %1530 = vst.msk [vmem:[#allocation11 + $0x38] sm:$0xff] %vm234_vm4, %v1519_v49  ;;  %v1685_v50 = vpop.f32.mrb[15].mxu1 }
 0x3b7   :  { %1881 = shalt.err (!%p1878_p2)
}
 0x3b8   :  { %s1882_s7 = scalar_lea.hbm %s2225_s5, 1024 }
 0x3b9   :  { %p1883_p3 = scmp.ne.s32.totalorder %s2225_s5, %s1882_s7  ;;  %p1886_p4 = scmp.lt.u32.totalorder %s1882_s7, %s2225_s5 }
 0x3bb   :  { %p1888_p5 = pnand %p1886_p4, %p1883_p3 }
 0x3bd   :  { %1891 = shalt.err (!%p1888_p5)
}
 0x3be   :  { %1542 = dma.vmem_to_hbm [thread:$0]  %s1537_s28, 1024, %s2225_s5, [#allocation4], %s1902_s30, %s1902_s30, %s1903_s6  }
 0x3bf   :  { %1898 = dma.done.wait [#allocation4], 1024  }
 0x3c0   :  { %1899 = vsyncadd [#allocation4], 4294966272 }
 0x3c1   :  { %1546 = vsyncpa [#allocation3], 1 }
 0x3c2   :  { %1547 = vsyncpa [#allocation6], 1 }
 0x3c3   :  { %1548 = vsyncpa [#allocation9], 1 }
 0x3c4   :  { %1549 = vsyncpa [#allocation4], 1 }

</bundles_post_ra>
